<compile_context>
chip_gen: v5e
topology: v5e:2x2
jax: 0.10.0
libtpu: 0.0.40
codegen_flags: <defaults>
</compile_context>

<pallas_src>
import functools

import jax
import jax.numpy as jnp
from jax import lax
from jax.experimental import pallas as pl
from jax.experimental.pallas import tpu as pltpu


def _round_up(x, m):
    return (x + m - 1) // m * m


def _lstm_fc_kernel(ids_ref, wcomb_ref, whh_ref, b_ref, wfc_ref, bfc_ref,
                    out_ref, *, seq_len, batch, hidden, vocab):
    """Fused embedding gather + LSTM recurrence + final Linear, VMEM resident.

    ids_ref:   (T*B, 1)  int32 time-major flattened token ids (row = t*B + b)
    wcomb_ref: (V, 4H)   emb_w @ W_ih^T, i/f/o columns pre-scaled by 0.5
    whh_ref:   (H, 4H)   W_hh^T, i/f/o columns pre-scaled by 0.5 (f32)
    b_ref:     (1, 4H)   b_ih + b_hh, i/f/o lanes pre-scaled by 0.5 (f32)
    wfc_ref:   (H, Cp)   fc weight^T, lane-padded to 128
    bfc_ref:   (1, Cp)   fc bias, lane-padded (f32)
    out_ref:   (B, Cp)   logits (f32)
    """
    H = hidden
    TB = seq_len * batch

    # 1) Fused embedding gather + input projection + bias for ALL timesteps:
    #    one-hot row selector (VPU compare) contracted on the MXU.  Exact row
    #    selection (0/1 operands, f32 accumulation).
    vlane = lax.broadcasted_iota(jnp.int32, (TB, vocab), 1)
    onehot = (vlane == ids_ref[...]).astype(wcomb_ref.dtype)           # (T*B, V)
    xproj = jnp.dot(onehot, wcomb_ref[...],
                    preferred_element_type=jnp.float32) + b_ref[...]   # (T*B, 4H)

    whh = whh_ref[...]                                                  # (H, 4H)

    # Hoisted lane mask: lanes [2H, 3H) hold the g (cell-candidate) gate.
    lane = lax.broadcasted_iota(jnp.int32, (batch, 4 * H), 1)
    g_mask = (lane >= 2 * H) & (lane < 3 * H)

    h = jnp.zeros((batch, H), jnp.float32)
    c = jnp.zeros((batch, H), jnp.float32)

    # 2) Serial recurrence, statically unrolled (short fixed T).  h/c live in
    #    vregs; each step is one (B, H) x (H, 4H) matmul, ONE tanh over the
    #    gate slab (sigmoid recovered as 0.5*t + 0.5 on the pre-scaled i/f/o
    #    lanes), and VPU state updates.  xproj slices start at multiples of
    #    batch (=8) -> sublane-tile aligned.
    for t in range(seq_len):
        gates = xproj[t * batch:(t + 1) * batch, :] + jnp.dot(
            h, whh, preferred_element_type=jnp.float32)
        tg = jnp.tanh(gates)                      # single EUP pass over (B,4H)
        acts = jnp.where(g_mask, tg, 0.5 * tg + 0.5)
        i_g = acts[:, 0 * H:1 * H]
        f_g = acts[:, 1 * H:2 * H]
        g_g = acts[:, 2 * H:3 * H]
        o_g = acts[:, 3 * H:4 * H]
        c = f_g * c + i_g * g_g
        h = o_g * jnp.tanh(c)

    # 3) Final linear layer on the last hidden state (lane-dense padded store).
    out_ref[...] = (
        jnp.dot(h.astype(wfc_ref.dtype), wfc_ref[...],
                preferred_element_type=jnp.float32) + bfc_ref[...])


def emotion_classifier_lstm_forward(token_ids, params, *, use_bf16=False):
    """Full forward pass matching EmotionClassifierLSTM.forward."""
    emb_w = params["emb_w"]          # (V, E)
    w_ih = params["w_ih"]            # (4H, E)  PyTorch layout, gate order ifgo
    w_hh = params["w_hh"]            # (4H, H)
    b_ih = params["b_ih"]            # (4H,)
    b_hh = params["b_hh"]            # (4H,)
    fc_w = params["fc_w"]            # (C, H)
    fc_b = params["fc_b"]            # (C,)

    B, T = token_ids.shape
    V = emb_w.shape[0]
    H = w_hh.shape[1]
    C = fc_w.shape[0]

    B_pad = _round_up(max(B, 8), 8)        # sublane-dense batch
    C_pad = _round_up(max(C, 128), 128)    # lane-dense output store

    # ---- Weight prep (precomputed once / cached in deployment). ----
    # Sigmoid half-angle pre-scale folded into the i/f/o gate columns so the
    # kernel needs only ONE tanh per step (exact: power-of-two scaling).
    gate_scale = jnp.concatenate([
        jnp.full((2 * H,), 0.5, jnp.float32),   # i, f
        jnp.ones((H,), jnp.float32),            # g (stays tanh)
        jnp.full((H,), 0.5, jnp.float32),       # o
    ]).reshape(1, 4 * H)
    # Fused embedding + input projection: row v of W_comb is emb_w[v] @ W_ih^T.
    w_comb = (emb_w.astype(jnp.float32)
              @ w_ih.T.astype(jnp.float32)) * gate_scale                # (V, 4H)
    whh_s = w_hh.T.astype(jnp.float32) * gate_scale                    # (H, 4H)
    bias_s = ((b_ih + b_hh).reshape(1, 4 * H) * gate_scale).astype(jnp.float32)
    wfc_t = jnp.pad(fc_w.T, ((0, 0), (0, C_pad - C)))                  # (H, Cp)
    bfc = jnp.pad(fc_b, (0, C_pad - C)).reshape(1, C_pad).astype(jnp.float32)

    if use_bf16:
        # Weights-only bf16 (the one-hot LHS is exact in any dtype); gate /
        # state / recurrence math stays f32.  Valid on v5e/v6e/v7x alike.
        w_comb = w_comb.astype(jnp.bfloat16)
        wfc_t = wfc_t.astype(jnp.bfloat16)

    # ---- Per-example prep: only the tiny int32 ids are touched outside the
    # kernel (pad + time-major flatten); the gather itself runs in-kernel.
    ids = jnp.pad(token_ids.astype(jnp.int32), ((0, B_pad - B), (0, 0)))
    ids_tm = jnp.transpose(ids, (1, 0)).reshape(T * B_pad, 1)          # (T*B, 1)

    operands = (ids_tm, w_comb, whh_s, bias_s, wfc_t, bfc)
    cost = pl.CostEstimate(
        flops=2 * (T * B_pad * V * 4 * H          # fused gather + projection
                   + T * B_pad * H * 4 * H        # recurrent matmuls
                   + B_pad * H * C_pad),          # final linear
        transcendentals=T * B_pad * 5 * H,        # one tanh slab + tanh(c)
        bytes_accessed=sum(int(a.size) * a.dtype.itemsize for a in operands)
                       + B_pad * C_pad * 4,
    )

    logits_padded = pl.pallas_call(
        functools.partial(_lstm_fc_kernel, seq_len=T, batch=B_pad,
                          hidden=H, vocab=V),
        out_shape=jax.ShapeDtypeStruct((B_pad, C_pad), jnp.float32),
        in_specs=[pl.BlockSpec(memory_space=pltpu.MemorySpace.VMEM)] * 6,
        out_specs=pl.BlockSpec(memory_space=pltpu.MemorySpace.VMEM),
        cost_estimate=cost,
    )(*operands)
    return logits_padded[:B, :C]


def _reference_forward(token_ids, params):
    """Pure-JAX reference (same math as PyTorch) for correctness check."""
    emb_w = params["emb_w"]
    w_ih, w_hh = params["w_ih"], params["w_hh"]
    b_ih, b_hh = params["b_ih"], params["b_hh"]
    fc_w, fc_b = params["fc_w"], params["fc_b"]
    H = w_hh.shape[1]

    x = emb_w[token_ids]                              # (B, T, E)
    B, T, _ = x.shape
    h = jnp.zeros((B, H), jnp.float32)
    c = jnp.zeros((B, H), jnp.float32)
    for t in range(T):
        gates = x[:, t, :] @ w_ih.T + h @ w_hh.T + b_ih + b_hh
        i_g = jax.nn.sigmoid(gates[:, 0 * H:1 * H])
        f_g = jax.nn.sigmoid(gates[:, 1 * H:2 * H])
        g_g = jnp.tanh(gates[:, 2 * H:3 * H])
        o_g = jax.nn.sigmoid(gates[:, 3 * H:4 * H])
        c = f_g * c + i_g * g_g
        h = o_g * jnp.tanh(c)
    return h @ fc_w.T + fc_b


def init_params(key, vocab_size, emb_size, hidden_size, num_classes):
    ks = jax.random.split(key, 7)
    bound = 1.0 / jnp.sqrt(hidden_size)
    fcb = 1.0 / jnp.sqrt(hidden_size)
    return {
        # nn.Embedding default: N(0, 1)
        "emb_w": jax.random.normal(ks[0], (vocab_size, emb_size), jnp.float32),
        # nn.LSTM default: U(-1/sqrt(H), 1/sqrt(H)), gate order [i, f, g, o]
        "w_ih": jax.random.uniform(ks[1], (4 * hidden_size, emb_size),
                                   jnp.float32, -bound, bound),
        "w_hh": jax.random.uniform(ks[2], (4 * hidden_size, hidden_size),
                                   jnp.float32, -bound, bound),
        "b_ih": jax.random.uniform(ks[3], (4 * hidden_size,),
                                   jnp.float32, -bound, bound),
        "b_hh": jax.random.uniform(ks[4], (4 * hidden_size,),
                                   jnp.float32, -bound, bound),
        # nn.Linear default: U(-1/sqrt(in), 1/sqrt(in))
        "fc_w": jax.random.uniform(ks[5], (num_classes, hidden_size),
                                   jnp.float32, -fcb, fcb),
        "fc_b": jax.random.uniform(ks[6], (num_classes,),
                                   jnp.float32, -fcb, fcb),
    }


if __name__ == "__main__":
    VOCAB, EMB, HIDDEN, CLASSES = 32, 16, 32, 4
    BATCH, SEQ = 2, 8

    key = jax.random.PRNGKey(0)
    k_tok, k_par = jax.random.split(key)
    params = init_params(k_par, VOCAB, EMB, HIDDEN, CLASSES)
    token_ids = jax.random.randint(k_tok, (BATCH, SEQ), 0, VOCAB, jnp.int32)

    ref = _reference_forward(token_ids, params)

    # f32 path: tight check vs pure-JAX reference (sigmoid-via-tanh differs
    # only at the ~1e-7 level).
    logits = jax.block_until_ready(
        emotion_classifier_lstm_forward(token_ids, params, use_bf16=False))
    assert logits.shape == (BATCH, CLASSES)
    assert jnp.allclose(logits, ref, atol=2e-5, rtol=2e-5), (
        "Pallas kernel (f32) mismatch vs JAX reference")

    # bf16 weights-only path: looser tolerance vs f32 reference.
    logits_bf16 = jax.block_until_ready(
        emotion_classifier_lstm_forward(token_ids, params, use_bf16=True))
    assert logits_bf16.shape == (BATCH, CLASSES)
    assert jnp.allclose(logits_bf16, ref, atol=1e-1, rtol=1e-1), (
        "Pallas kernel (bf16) mismatch vs JAX reference")

    print("KERNEL_OK")
</pallas_src>

<mosaic_0001>
module attributes {stable_mosaic.version = 11 : i64} {
  func.func @_lstm_fc_kernel(%arg0: memref<64x1xi32, #tpu.memory_space<vmem>>, %arg1: memref<32x128xf32, #tpu.memory_space<vmem>>, %arg2: memref<32x128xf32, #tpu.memory_space<vmem>>, %arg3: memref<1x128xf32, #tpu.memory_space<vmem>>, %arg4: memref<32x128xf32, #tpu.memory_space<vmem>>, %arg5: memref<1x128xf32, #tpu.memory_space<vmem>>, %arg6: memref<8x128xf32, #tpu.memory_space<vmem>>) attributes {dimension_semantics = [], scalar_prefetch = 0 : i64, scratch_operands = 0 : i64, tpu.core_type = #tpu.core_type<tc>} {
    %0 = tpu.iota {dimensions = array<i32: 1>} : vector<64x32xi32>
    %c0 = arith.constant 0 : index
    %c0_0 = arith.constant 0 : index
    %1 = vector.load %arg0[%c0, %c0_0] : memref<64x1xi32, #tpu.memory_space<vmem>>, vector<64x1xi32>
    %2 = vector.broadcast %1 : vector<64x1xi32> to vector<64x32xi32>
    %3 = arith.cmpi eq, %0, %2 : vector<64x32xi32>
    %4 = arith.extui %3 : vector<64x32xi1> to vector<64x32xi32>
    %5 = arith.sitofp %4 : vector<64x32xi32> to vector<64x32xf32>
    %c0_1 = arith.constant 0 : index
    %c0_2 = arith.constant 0 : index
    %6 = vector.load %arg1[%c0_1, %c0_2] : memref<32x128xf32, #tpu.memory_space<vmem>>, vector<32x128xf32>
    %cst = arith.constant dense<0.000000e+00> : vector<64x128xf32>
    %7 = tpu.matmul %5, %6, %cst {dimension_numbers = #tpu.dot_dimension_numbers<[1], [0], [0], [1], [0, 0, 1, 1], [], []>} : vector<64x32xf32>, vector<32x128xf32>, vector<64x128xf32> -> vector<64x128xf32>
    %c0_3 = arith.constant 0 : index
    %c0_4 = arith.constant 0 : index
    %8 = vector.load %arg3[%c0_3, %c0_4] : memref<1x128xf32, #tpu.memory_space<vmem>>, vector<1x128xf32>
    %9 = vector.broadcast %8 : vector<1x128xf32> to vector<64x128xf32>
    %10 = arith.addf %7, %9 : vector<64x128xf32>
    %c0_5 = arith.constant 0 : index
    %c0_6 = arith.constant 0 : index
    %11 = vector.load %arg2[%c0_5, %c0_6] : memref<32x128xf32, #tpu.memory_space<vmem>>, vector<32x128xf32>
    %12 = tpu.iota {dimensions = array<i32: 1>} : vector<8x128xi32>
    %c64_i32 = arith.constant 64 : i32
    %13 = vector.broadcast %c64_i32 : i32 to vector<8x128xi32>
    %14 = arith.cmpi sge, %12, %13 : vector<8x128xi32>
    %c96_i32 = arith.constant 96 : i32
    %15 = vector.broadcast %c96_i32 : i32 to vector<8x128xi32>
    %16 = arith.cmpi slt, %12, %15 : vector<8x128xi32>
    %17 = arith.andi %14, %16 : vector<8x128xi1>
    %cst_7 = arith.constant 0.000000e+00 : f32
    %18 = vector.broadcast %cst_7 : f32 to vector<8x32xf32>
    %cst_8 = arith.constant 0.000000e+00 : f32
    %19 = vector.broadcast %cst_8 : f32 to vector<8x32xf32>
    %20 = vector.extract_strided_slice %10 {offsets = [0, 0], sizes = [8, 128], strides = [1, 1]} : vector<64x128xf32> to vector<8x128xf32>
    %cst_9 = arith.constant dense<0.000000e+00> : vector<8x128xf32>
    %21 = tpu.matmul %18, %11, %cst_9 {dimension_numbers = #tpu.dot_dimension_numbers<[1], [0], [0], [1], [0, 0, 1, 1], [], []>} : vector<8x32xf32>, vector<32x128xf32>, vector<8x128xf32> -> vector<8x128xf32>
    %22 = arith.addf %20, %21 : vector<8x128xf32>
    %23 = math.tanh %22 : vector<8x128xf32>
    %cst_10 = arith.constant 5.000000e-01 : f32
    %24 = vector.broadcast %cst_10 : f32 to vector<8x128xf32>
    %25 = arith.mulf %24, %23 : vector<8x128xf32>
    %cst_11 = arith.constant 5.000000e-01 : f32
    %26 = vector.broadcast %cst_11 : f32 to vector<8x128xf32>
    %27 = arith.addf %25, %26 : vector<8x128xf32>
    %28 = arith.select %17, %23, %27 : vector<8x128xi1>, vector<8x128xf32>
    %29 = vector.extract_strided_slice %28 {offsets = [0, 0], sizes = [8, 32], strides = [1, 1]} : vector<8x128xf32> to vector<8x32xf32>
    %30 = vector.extract_strided_slice %28 {offsets = [0, 32], sizes = [8, 32], strides = [1, 1]} : vector<8x128xf32> to vector<8x32xf32>
    %31 = vector.extract_strided_slice %28 {offsets = [0, 64], sizes = [8, 32], strides = [1, 1]} : vector<8x128xf32> to vector<8x32xf32>
    %32 = vector.extract_strided_slice %28 {offsets = [0, 96], sizes = [8, 32], strides = [1, 1]} : vector<8x128xf32> to vector<8x32xf32>
    %33 = arith.mulf %30, %19 : vector<8x32xf32>
    %34 = arith.mulf %29, %31 : vector<8x32xf32>
    %35 = arith.addf %33, %34 : vector<8x32xf32>
    %36 = math.tanh %35 : vector<8x32xf32>
    %37 = arith.mulf %32, %36 : vector<8x32xf32>
    %38 = vector.extract_strided_slice %10 {offsets = [8, 0], sizes = [8, 128], strides = [1, 1]} : vector<64x128xf32> to vector<8x128xf32>
    %cst_12 = arith.constant dense<0.000000e+00> : vector<8x128xf32>
    %39 = tpu.matmul %37, %11, %cst_12 {dimension_numbers = #tpu.dot_dimension_numbers<[1], [0], [0], [1], [0, 0, 1, 1], [], []>} : vector<8x32xf32>, vector<32x128xf32>, vector<8x128xf32> -> vector<8x128xf32>
    %40 = arith.addf %38, %39 : vector<8x128xf32>
    %41 = math.tanh %40 : vector<8x128xf32>
    %cst_13 = arith.constant 5.000000e-01 : f32
    %42 = vector.broadcast %cst_13 : f32 to vector<8x128xf32>
    %43 = arith.mulf %42, %41 : vector<8x128xf32>
    %cst_14 = arith.constant 5.000000e-01 : f32
    %44 = vector.broadcast %cst_14 : f32 to vector<8x128xf32>
    %45 = arith.addf %43, %44 : vector<8x128xf32>
    %46 = arith.select %17, %41, %45 : vector<8x128xi1>, vector<8x128xf32>
    %47 = vector.extract_strided_slice %46 {offsets = [0, 0], sizes = [8, 32], strides = [1, 1]} : vector<8x128xf32> to vector<8x32xf32>
    %48 = vector.extract_strided_slice %46 {offsets = [0, 32], sizes = [8, 32], strides = [1, 1]} : vector<8x128xf32> to vector<8x32xf32>
    %49 = vector.extract_strided_slice %46 {offsets = [0, 64], sizes = [8, 32], strides = [1, 1]} : vector<8x128xf32> to vector<8x32xf32>
    %50 = vector.extract_strided_slice %46 {offsets = [0, 96], sizes = [8, 32], strides = [1, 1]} : vector<8x128xf32> to vector<8x32xf32>
    %51 = arith.mulf %48, %35 : vector<8x32xf32>
    %52 = arith.mulf %47, %49 : vector<8x32xf32>
    %53 = arith.addf %51, %52 : vector<8x32xf32>
    %54 = math.tanh %53 : vector<8x32xf32>
    %55 = arith.mulf %50, %54 : vector<8x32xf32>
    %56 = vector.extract_strided_slice %10 {offsets = [16, 0], sizes = [8, 128], strides = [1, 1]} : vector<64x128xf32> to vector<8x128xf32>
    %cst_15 = arith.constant dense<0.000000e+00> : vector<8x128xf32>
    %57 = tpu.matmul %55, %11, %cst_15 {dimension_numbers = #tpu.dot_dimension_numbers<[1], [0], [0], [1], [0, 0, 1, 1], [], []>} : vector<8x32xf32>, vector<32x128xf32>, vector<8x128xf32> -> vector<8x128xf32>
    %58 = arith.addf %56, %57 : vector<8x128xf32>
    %59 = math.tanh %58 : vector<8x128xf32>
    %cst_16 = arith.constant 5.000000e-01 : f32
    %60 = vector.broadcast %cst_16 : f32 to vector<8x128xf32>
    %61 = arith.mulf %60, %59 : vector<8x128xf32>
    %cst_17 = arith.constant 5.000000e-01 : f32
    %62 = vector.broadcast %cst_17 : f32 to vector<8x128xf32>
    %63 = arith.addf %61, %62 : vector<8x128xf32>
    %64 = arith.select %17, %59, %63 : vector<8x128xi1>, vector<8x128xf32>
    %65 = vector.extract_strided_slice %64 {offsets = [0, 0], sizes = [8, 32], strides = [1, 1]} : vector<8x128xf32> to vector<8x32xf32>
    %66 = vector.extract_strided_slice %64 {offsets = [0, 32], sizes = [8, 32], strides = [1, 1]} : vector<8x128xf32> to vector<8x32xf32>
    %67 = vector.extract_strided_slice %64 {offsets = [0, 64], sizes = [8, 32], strides = [1, 1]} : vector<8x128xf32> to vector<8x32xf32>
    %68 = vector.extract_strided_slice %64 {offsets = [0, 96], sizes = [8, 32], strides = [1, 1]} : vector<8x128xf32> to vector<8x32xf32>
    %69 = arith.mulf %66, %53 : vector<8x32xf32>
    %70 = arith.mulf %65, %67 : vector<8x32xf32>
    %71 = arith.addf %69, %70 : vector<8x32xf32>
    %72 = math.tanh %71 : vector<8x32xf32>
    %73 = arith.mulf %68, %72 : vector<8x32xf32>
    %74 = vector.extract_strided_slice %10 {offsets = [24, 0], sizes = [8, 128], strides = [1, 1]} : vector<64x128xf32> to vector<8x128xf32>
    %cst_18 = arith.constant dense<0.000000e+00> : vector<8x128xf32>
    %75 = tpu.matmul %73, %11, %cst_18 {dimension_numbers = #tpu.dot_dimension_numbers<[1], [0], [0], [1], [0, 0, 1, 1], [], []>} : vector<8x32xf32>, vector<32x128xf32>, vector<8x128xf32> -> vector<8x128xf32>
    %76 = arith.addf %74, %75 : vector<8x128xf32>
    %77 = math.tanh %76 : vector<8x128xf32>
    %cst_19 = arith.constant 5.000000e-01 : f32
    %78 = vector.broadcast %cst_19 : f32 to vector<8x128xf32>
    %79 = arith.mulf %78, %77 : vector<8x128xf32>
    %cst_20 = arith.constant 5.000000e-01 : f32
    %80 = vector.broadcast %cst_20 : f32 to vector<8x128xf32>
    %81 = arith.addf %79, %80 : vector<8x128xf32>
    %82 = arith.select %17, %77, %81 : vector<8x128xi1>, vector<8x128xf32>
    %83 = vector.extract_strided_slice %82 {offsets = [0, 0], sizes = [8, 32], strides = [1, 1]} : vector<8x128xf32> to vector<8x32xf32>
    %84 = vector.extract_strided_slice %82 {offsets = [0, 32], sizes = [8, 32], strides = [1, 1]} : vector<8x128xf32> to vector<8x32xf32>
    %85 = vector.extract_strided_slice %82 {offsets = [0, 64], sizes = [8, 32], strides = [1, 1]} : vector<8x128xf32> to vector<8x32xf32>
    %86 = vector.extract_strided_slice %82 {offsets = [0, 96], sizes = [8, 32], strides = [1, 1]} : vector<8x128xf32> to vector<8x32xf32>
    %87 = arith.mulf %84, %71 : vector<8x32xf32>
    %88 = arith.mulf %83, %85 : vector<8x32xf32>
    %89 = arith.addf %87, %88 : vector<8x32xf32>
    %90 = math.tanh %89 : vector<8x32xf32>
    %91 = arith.mulf %86, %90 : vector<8x32xf32>
    %92 = vector.extract_strided_slice %10 {offsets = [32, 0], sizes = [8, 128], strides = [1, 1]} : vector<64x128xf32> to vector<8x128xf32>
    %cst_21 = arith.constant dense<0.000000e+00> : vector<8x128xf32>
    %93 = tpu.matmul %91, %11, %cst_21 {dimension_numbers = #tpu.dot_dimension_numbers<[1], [0], [0], [1], [0, 0, 1, 1], [], []>} : vector<8x32xf32>, vector<32x128xf32>, vector<8x128xf32> -> vector<8x128xf32>
    %94 = arith.addf %92, %93 : vector<8x128xf32>
    %95 = math.tanh %94 : vector<8x128xf32>
    %cst_22 = arith.constant 5.000000e-01 : f32
    %96 = vector.broadcast %cst_22 : f32 to vector<8x128xf32>
    %97 = arith.mulf %96, %95 : vector<8x128xf32>
    %cst_23 = arith.constant 5.000000e-01 : f32
    %98 = vector.broadcast %cst_23 : f32 to vector<8x128xf32>
    %99 = arith.addf %97, %98 : vector<8x128xf32>
    %100 = arith.select %17, %95, %99 : vector<8x128xi1>, vector<8x128xf32>
    %101 = vector.extract_strided_slice %100 {offsets = [0, 0], sizes = [8, 32], strides = [1, 1]} : vector<8x128xf32> to vector<8x32xf32>
    %102 = vector.extract_strided_slice %100 {offsets = [0, 32], sizes = [8, 32], strides = [1, 1]} : vector<8x128xf32> to vector<8x32xf32>
    %103 = vector.extract_strided_slice %100 {offsets = [0, 64], sizes = [8, 32], strides = [1, 1]} : vector<8x128xf32> to vector<8x32xf32>
    %104 = vector.extract_strided_slice %100 {offsets = [0, 96], sizes = [8, 32], strides = [1, 1]} : vector<8x128xf32> to vector<8x32xf32>
    %105 = arith.mulf %102, %89 : vector<8x32xf32>
    %106 = arith.mulf %101, %103 : vector<8x32xf32>
    %107 = arith.addf %105, %106 : vector<8x32xf32>
    %108 = math.tanh %107 : vector<8x32xf32>
    %109 = arith.mulf %104, %108 : vector<8x32xf32>
    %110 = vector.extract_strided_slice %10 {offsets = [40, 0], sizes = [8, 128], strides = [1, 1]} : vector<64x128xf32> to vector<8x128xf32>
    %cst_24 = arith.constant dense<0.000000e+00> : vector<8x128xf32>
    %111 = tpu.matmul %109, %11, %cst_24 {dimension_numbers = #tpu.dot_dimension_numbers<[1], [0], [0], [1], [0, 0, 1, 1], [], []>} : vector<8x32xf32>, vector<32x128xf32>, vector<8x128xf32> -> vector<8x128xf32>
    %112 = arith.addf %110, %111 : vector<8x128xf32>
    %113 = math.tanh %112 : vector<8x128xf32>
    %cst_25 = arith.constant 5.000000e-01 : f32
    %114 = vector.broadcast %cst_25 : f32 to vector<8x128xf32>
    %115 = arith.mulf %114, %113 : vector<8x128xf32>
    %cst_26 = arith.constant 5.000000e-01 : f32
    %116 = vector.broadcast %cst_26 : f32 to vector<8x128xf32>
    %117 = arith.addf %115, %116 : vector<8x128xf32>
    %118 = arith.select %17, %113, %117 : vector<8x128xi1>, vector<8x128xf32>
    %119 = vector.extract_strided_slice %118 {offsets = [0, 0], sizes = [8, 32], strides = [1, 1]} : vector<8x128xf32> to vector<8x32xf32>
    %120 = vector.extract_strided_slice %118 {offsets = [0, 32], sizes = [8, 32], strides = [1, 1]} : vector<8x128xf32> to vector<8x32xf32>
    %121 = vector.extract_strided_slice %118 {offsets = [0, 64], sizes = [8, 32], strides = [1, 1]} : vector<8x128xf32> to vector<8x32xf32>
    %122 = vector.extract_strided_slice %118 {offsets = [0, 96], sizes = [8, 32], strides = [1, 1]} : vector<8x128xf32> to vector<8x32xf32>
    %123 = arith.mulf %120, %107 : vector<8x32xf32>
    %124 = arith.mulf %119, %121 : vector<8x32xf32>
    %125 = arith.addf %123, %124 : vector<8x32xf32>
    %126 = math.tanh %125 : vector<8x32xf32>
    %127 = arith.mulf %122, %126 : vector<8x32xf32>
    %128 = vector.extract_strided_slice %10 {offsets = [48, 0], sizes = [8, 128], strides = [1, 1]} : vector<64x128xf32> to vector<8x128xf32>
    %cst_27 = arith.constant dense<0.000000e+00> : vector<8x128xf32>
    %129 = tpu.matmul %127, %11, %cst_27 {dimension_numbers = #tpu.dot_dimension_numbers<[1], [0], [0], [1], [0, 0, 1, 1], [], []>} : vector<8x32xf32>, vector<32x128xf32>, vector<8x128xf32> -> vector<8x128xf32>
    %130 = arith.addf %128, %129 : vector<8x128xf32>
    %131 = math.tanh %130 : vector<8x128xf32>
    %cst_28 = arith.constant 5.000000e-01 : f32
    %132 = vector.broadcast %cst_28 : f32 to vector<8x128xf32>
    %133 = arith.mulf %132, %131 : vector<8x128xf32>
    %cst_29 = arith.constant 5.000000e-01 : f32
    %134 = vector.broadcast %cst_29 : f32 to vector<8x128xf32>
    %135 = arith.addf %133, %134 : vector<8x128xf32>
    %136 = arith.select %17, %131, %135 : vector<8x128xi1>, vector<8x128xf32>
    %137 = vector.extract_strided_slice %136 {offsets = [0, 0], sizes = [8, 32], strides = [1, 1]} : vector<8x128xf32> to vector<8x32xf32>
    %138 = vector.extract_strided_slice %136 {offsets = [0, 32], sizes = [8, 32], strides = [1, 1]} : vector<8x128xf32> to vector<8x32xf32>
    %139 = vector.extract_strided_slice %136 {offsets = [0, 64], sizes = [8, 32], strides = [1, 1]} : vector<8x128xf32> to vector<8x32xf32>
    %140 = vector.extract_strided_slice %136 {offsets = [0, 96], sizes = [8, 32], strides = [1, 1]} : vector<8x128xf32> to vector<8x32xf32>
    %141 = arith.mulf %138, %125 : vector<8x32xf32>
    %142 = arith.mulf %137, %139 : vector<8x32xf32>
    %143 = arith.addf %141, %142 : vector<8x32xf32>
    %144 = math.tanh %143 : vector<8x32xf32>
    %145 = arith.mulf %140, %144 : vector<8x32xf32>
    %146 = vector.extract_strided_slice %10 {offsets = [56, 0], sizes = [8, 128], strides = [1, 1]} : vector<64x128xf32> to vector<8x128xf32>
    %cst_30 = arith.constant dense<0.000000e+00> : vector<8x128xf32>
    %147 = tpu.matmul %145, %11, %cst_30 {dimension_numbers = #tpu.dot_dimension_numbers<[1], [0], [0], [1], [0, 0, 1, 1], [], []>} : vector<8x32xf32>, vector<32x128xf32>, vector<8x128xf32> -> vector<8x128xf32>
    %148 = arith.addf %146, %147 : vector<8x128xf32>
    %149 = math.tanh %148 : vector<8x128xf32>
    %cst_31 = arith.constant 5.000000e-01 : f32
    %150 = vector.broadcast %cst_31 : f32 to vector<8x128xf32>
    %151 = arith.mulf %150, %149 : vector<8x128xf32>
    %cst_32 = arith.constant 5.000000e-01 : f32
    %152 = vector.broadcast %cst_32 : f32 to vector<8x128xf32>
    %153 = arith.addf %151, %152 : vector<8x128xf32>
    %154 = arith.select %17, %149, %153 : vector<8x128xi1>, vector<8x128xf32>
    %155 = vector.extract_strided_slice %154 {offsets = [0, 0], sizes = [8, 32], strides = [1, 1]} : vector<8x128xf32> to vector<8x32xf32>
    %156 = vector.extract_strided_slice %154 {offsets = [0, 32], sizes = [8, 32], strides = [1, 1]} : vector<8x128xf32> to vector<8x32xf32>
    %157 = vector.extract_strided_slice %154 {offsets = [0, 64], sizes = [8, 32], strides = [1, 1]} : vector<8x128xf32> to vector<8x32xf32>
    %158 = vector.extract_strided_slice %154 {offsets = [0, 96], sizes = [8, 32], strides = [1, 1]} : vector<8x128xf32> to vector<8x32xf32>
    %159 = arith.mulf %156, %143 : vector<8x32xf32>
    %160 = arith.mulf %155, %157 : vector<8x32xf32>
    %161 = arith.addf %159, %160 : vector<8x32xf32>
    %162 = math.tanh %161 : vector<8x32xf32>
    %163 = arith.mulf %158, %162 : vector<8x32xf32>
    %c0_33 = arith.constant 0 : index
    %c0_34 = arith.constant 0 : index
    %164 = vector.load %arg4[%c0_33, %c0_34] : memref<32x128xf32, #tpu.memory_space<vmem>>, vector<32x128xf32>
    %cst_35 = arith.constant dense<0.000000e+00> : vector<8x128xf32>
    %165 = tpu.matmul %163, %164, %cst_35 {dimension_numbers = #tpu.dot_dimension_numbers<[1], [0], [0], [1], [0, 0, 1, 1], [], []>} : vector<8x32xf32>, vector<32x128xf32>, vector<8x128xf32> -> vector<8x128xf32>
    %c0_36 = arith.constant 0 : index
    %c0_37 = arith.constant 0 : index
    %166 = vector.load %arg5[%c0_36, %c0_37] : memref<1x128xf32, #tpu.memory_space<vmem>>, vector<1x128xf32>
    %167 = vector.broadcast %166 : vector<1x128xf32> to vector<8x128xf32>
    %168 = arith.addf %165, %167 : vector<8x128xf32>
    %c0_38 = arith.constant 0 : index
    %c0_39 = arith.constant 0 : index
    %169 = vector.load %arg6[%c0_38, %c0_39] : memref<8x128xf32, #tpu.memory_space<vmem>>, vector<8x128xf32>
    tpu.vector_store %arg6[%c0_38, %c0_39], %168 {strides = array<i32>} : memref<8x128xf32, #tpu.memory_space<vmem>>, vector<8x128xf32>,
    return
  }
}

</mosaic_0001>

<bundles_post_ra>
// kernel: tpu_custom_call.1
= control target key start
LH: loop header
LB: loop body
LE: loop exit
PB: predicated region body
PF: predicated region fallthrough
CT: control target
= control target key end

     0   :  { %11 = vsyncpa [#allocation3], 0  ;;  %s984_s0 = inlined_call_operand.vmem [shape: s32[64,1], index: 0, kind: input, shape index: {}]   ;;  %s985_s1 = inlined_call_operand.vmem [shape: f32[32,128], index: 1, kind: input, shape index: {}]   ;;  %s986_s2 = inlined_call_operand.vmem [shape: f32[32,128], index: 2, kind: input, shape index: {}]   ;;  %s987_s3 = inlined_call_operand.vmem [shape: f32[1,128], index: 3, kind: input, shape index: {}]   ;;  %s988_s4 = inlined_call_operand.hbm [shape: f32[32,128], index: 4, kind: input, shape index: {}]   ;;  %s989_s5 = inlined_call_operand.vmem [shape: f32[1,128], index: 5, kind: input, shape index: {}]   ;;  %s990_s6 = inlined_call_operand.hbm [shape: f32[8,128], index: 6, kind: output, shape index: {}]  }
   0x1   :  { %12 = vsyncpa [#allocation4], 0  ;;  %s25_s23 = sshll.u32 %s988_s4, 4  ;;  %s733_s24 = smov [#allocation2]   ;;  %s26_s23 = int_to_ptr.hbm [resolvable:$true] %s25_s23 }
   0x2   :  { %s27_s25 = sshll.u32 %s733_s24, 4  ;;  %s734_s26 = smov 128   ;;  %s28_s25 = int_to_ptr.vmem [resolvable:$true] %s27_s25 }
   0x3   :  { %s735_s27 = smov 8  }
   0x4   :  { %33 = dma.hbm_to_vmem [thread:$0]  %s26_s23, 512, %s28_s25, [#allocation3], %s734_s26, %s734_s26, %s735_s27  }
   0x5   :  { %729 = dma.done.wait [#allocation3], 512  }
   0x6   :  { %730 = vsyncadd [#allocation3], 4294966784  ;;  %v736_v0 = vmov 0   ;;  %v47_v1 = vld [vmem:[%s984_s0 + $0x28] sm:$0xff]  ;;  %v101_v2 = vld [vmem:[%s985_s1 + $0x18] sm:$0xff]  ;;  %v40_v12 = vlaneseq  ;;  %vm106_vm0 = vcmask 261120  }
   0x7   :  { %644 = vset.pattern.permute.xlu0 %v736_v0  ;;  %645 = vset.pattern.permute.xlu2 %v736_v0  ;;  %v100_v3 = vld [vmem:[%s985_s1 + $0x10] sm:$0xff]  ;;  %v99_v4 = vld [vmem:[%s985_s1 + $0x8] sm:$0xff]  ;;  %v42_v5 = vld [vmem:[%s984_s0] sm:$0xff]  ;;  %v737_v15 = vmov 0.0   ;;  %s739_s25 = smov 32   ;;  %s740_s12 = smov [#allocation5]  }
   0x8   :  { %646 = vset.pattern.permute.xlu1 %v736_v0  ;;  %66 = vperm.xlu0 %644, %v47_v1   ;;  %v49_v6 = vld [vmem:[%s984_s0 + $0x38] sm:$0xff]  ;;  %v98_v7 = vld [vmem:[%s985_s1] sm:$0xff]  ;;  %v808_v9 = vld [vmem:[%s986_s2 + $0x10] sm:$0xff]  ;;  %v836_v13 = vand.u32 127, %v40_v12  ;;  %s592_s13 = sshll.u32 %s740_s12, 4  ;;  %s594_s16 = sshll.u32 %s990_s6, 4  ;;  %s593_s13 = int_to_ptr.vmem [resolvable:$true] %s592_s13  ;;  %s595_s16 = int_to_ptr.hbm [resolvable:$true] %s594_s16 }
   0x9   :  { %628 = vmatpush.msra.mxu1 %v101_v2  ;;  %143 = vmatpush.msra.mxu0 %v101_v2  ;;  %v803_v8 = vld [vmem:[%s986_s2 + $0x18] sm:$0xff]  ;;  %v819_v10 = vld [vmem:[%s986_s2 + $0x8] sm:$0xff]  ;;  %v826_v11 = vld [vmem:[%s986_s2] sm:$0xff] }
   0xa   :  { %629 = vmatpush.msra.mxu2 %v101_v2  ;;  %288 = vmatpush.msra.mxu3 %v803_v8  ;;  %v858_v20 = vld [vmem:[%s987_s3] ss:$0 sm:$0xff]  ;;  %vm176_vm3 = vcmp.ge.s32.totalorder %v836_v13, 64  ;;  %vm177_vm4 = vcmp.lt.s32.totalorder %v836_v13, 96  ;;  %s738_s3 = smov 64   ;;  %v48_v36 = vld [vmem:[%s984_s0 + $0x30] sm:$0xff] }
   0xb   :  { %630 = vmatpush.msra.mxu1 %v100_v3  ;;  %144 = vmatpush.msra.mxu0 %v100_v3  ;;  %vm863_vm5 = vmand %vm176_vm3, %vm177_vm4  ;;  %v43_v37 = vld [vmem:[%s984_s0 + $0x8] sm:$0xff]  ;;  %v44_v63 = vld [vmem:[%s984_s0 + $0x10] sm:$0xff] }
   0xc   :  { %631 = vmatpush.msra.mxu2 %v100_v3  ;;  %289 = vmatpush.msra.mxu3 %v808_v9  ;;  %v553_v27 = vld [vmem:[#allocation2] sm:$0xff] }
   0xd   :  { %632 = vmatpush.msra.mxu1 %v99_v4  ;;  %145 = vmatpush.msra.mxu0 %v99_v4 }
   0xe   :  { %633 = vmatpush.msra.mxu2 %v99_v4  ;;  %290 = vmatpush.msra.mxu3 %v819_v10 }
   0xf   :  { %634 = vmatpush.msra.mxu1 %v98_v7  ;;  %146 = vmatpush.msra.mxu0 %v98_v7 }
  0x10   :  { %51 = vperm.xlu0 %644, %v42_v5   ;;  %635 = vmatpush.msra.mxu2 %v98_v7 }
  0x11   :  { %194 = vmatpush.msrb.mxu1 %v803_v8  ;;  %291 = vmatpush.msra.mxu3 %v826_v11 }
  0x12   :  { %241 = vmatpush.msrb.mxu2 %v803_v8 }
  0x13   :  { %195 = vmatpush.msrb.mxu1 %v808_v9  ;;  %429 = vmatpush.msrb.mxu3 %v803_v8 }
  0x14   :  { %242 = vmatpush.msrb.mxu2 %v808_v9 }
  0x15   :  { %196 = vmatpush.msrb.mxu1 %v819_v10  ;;  %430 = vmatpush.msrb.mxu3 %v808_v9 }
  0x16   :  { %243 = vmatpush.msrb.mxu2 %v819_v10 }
  0x17   :  { %197 = vmatpush.msrb.mxu1 %v826_v11  ;;  %431 = vmatpush.msrb.mxu3 %v819_v10 }
  0x18   :  { %72 = vperm.xlu0 %644, %v49_v6   ;;  %244 = vmatpush.msrb.mxu2 %v826_v11 }
  0x19   :  { %432 = vmatpush.msrb.mxu3 %v826_v11 }
  0x7a   :  { %v67_v14 = vpop.permute.xlu0 %66 }
  0x7b   :  { %vm79_vm1 = vcmp.eq.s32.totalorder %v836_v13, %v67_v14  ;;  %v45_v14 = vld [vmem:[%s984_s0 + $0x18] sm:$0xff] }
  0x7c   :  { %v609_v16 = vsel %vm79_vm1, 1.0, %v737_v15 }
  0x7d   :  { %617 = vmatmul.msk.f32.vlgmr.msra.gmra.mxu1 %vm106_vm0, %v609_v16 }
  0x7e   :  { %335 = vmatpush.msra.mxu1 %v803_v8 }
  0x80   :  { %336 = vmatpush.msra.mxu1 %v808_v9 }
  0x82   :  { %v52_v17 = vpop.permute.xlu0 %51  ;;  %337 = vmatpush.msra.mxu1 %v819_v10 }
  0x83   :  { %vm74_vm2 = vcmp.eq.s32.totalorder %v836_v13, %v52_v17 }
  0x84   :  { %v604_v18 = vsel %vm74_vm2, 1.0, %v737_v15  ;;  %338 = vmatpush.msra.mxu1 %v826_v11 }
  0x85   :  { %612 = vmatmul.msk.f32.vlgmr.msra.gmra.mxu0 %vm106_vm0, %v604_v18  ;;  %198 = vmatmul.f32.vlgmr.msrb.gmra.mxu1 %v737_v15 }
  0x86   :  { %476 = vmatpush.msrb.mxu1 %v803_v8 }
  0x88   :  { %477 = vmatpush.msrb.mxu1 %v808_v9 }
  0x8a   :  { %478 = vmatpush.msrb.mxu1 %v819_v10  ;;  %v73_v42 = vpop.permute.xlu0 %72 }
  0x8b   :  { %vm81_vm7 = vcmp.eq.s32.totalorder %v836_v13, %v73_v42 }
  0x8c   :  { %479 = vmatpush.msrb.mxu1 %v826_v11  ;;  %v611_v43 = vsel %vm81_vm7, 1.0, %v737_v15 }
  0xfa   :  { %v853_v19 = vpop.f32.mrf.mxu1 }
 0x102   :  { %v148_v21 = vpop.f32.mrf.mxu0  ;;  %v199_v22 = vpop.f32.mrf.mxu1 }
 0x103   :  { %v149_v23 = vadd.f32 %v858_v20, %v148_v21 }
 0x105   :  { %v202_v24 = vadd.f32 %v199_v22, %v149_v23 }
 0x107   :  { %649 = vtanh.f32 %v202_v24 }
 0x10d   :  { %v650_v25 = vpop.eup %649 }
 0x10e   :  { %v204_v26 = vmul.f32 0.5, %v650_v25 }
 0x110   :  { %v205_v28 = vadd.f32 0.5, %v204_v26 }
 0x112   :  { %v206_v29 = vsel %vm863_vm5, %v650_v25, %v205_v28 }
 0x113   :  { %209 = vrot.lane.b32.xlu1 %v206_v29, %s738_s3  ;;  %v207_v32 = vmul.f32 0.0, %v206_v29 }
 0x185   :  { %v210_v30 = vpop.permute.xlu1 %209 }
 0x186   :  { %v212_v31 = vmul.f32 %v210_v30, %v206_v29 }
 0x188   :  { %214 = vrot.lane.b32.xlu1 %v212_v31, %s739_s25 }
 0x1fa   :  { %v215_v33 = vpop.permute.xlu1 %214 }
 0x1fb   :  { %v217_v34 = vadd.f32 %v215_v33, %v207_v32 }
 0x1fd   :  { %651 = vtanh.f32 %v217_v34 }
 0x203   :  { %v652_v35 = vpop.eup %651 }
 0x204   :  { %220 = vrot.lane.b32.xlu2 %v652_v35, %s738_s3 }
 0x20c   :  { %69 = vperm.xlu2 %645, %v48_v36  }
 0x214   :  { %54 = vperm.xlu2 %645, %v43_v37  }
 0x25e   :  { %v221_v38 = vpop.permute.xlu2 %220 }
 0x25f   :  { %v223_v39 = vmul.f32 %v221_v38, %v206_v29 }
 0x261   :  { %225 = vrot.lane.b32.xlu1 %v223_v39, %s739_s25 }
 0x266   :  { %v70_v40 = vpop.permute.xlu2 %69 }
 0x267   :  { %vm80_vm6 = vcmp.eq.s32.totalorder %v836_v13, %v70_v40  ;;  %v46_v40 = vld [vmem:[%s984_s0 + $0x20] sm:$0xff] }
 0x268   :  { %v610_v41 = vsel %vm80_vm6, 1.0, %v737_v15 }
 0x269   :  { %618 = vmatmul.msk.f32.vlgmr.msra.gmra.mxu2 %vm106_vm0, %v610_v41 }
 0x26a   :  { %382 = vmatpush.msra.mxu2 %v803_v8 }
 0x26c   :  { %383 = vmatpush.msra.mxu2 %v808_v9 }
 0x26e   :  { %384 = vmatpush.msra.mxu2 %v819_v10  ;;  %v55_v44 = vpop.permute.xlu2 %54 }
 0x26f   :  { %vm75_vm8 = vcmp.eq.s32.totalorder %v836_v13, %v55_v44 }
 0x270   :  { %385 = vmatpush.msra.mxu2 %v826_v11  ;;  %v605_v45 = vsel %vm75_vm8, 1.0, %v737_v15 }
 0x271   :  { %619 = vmatmul.msk.f32.gmra.mxu2 %vm106_vm0, %v611_v43  ;;  %613 = vmatmul.msk.f32.gmra.mxu0 %vm106_vm0, %v605_v45 }
 0x2d3   :  { %v226_v46 = vpop.permute.xlu1 %225 }
 0x2d4   :  { %620 = vmatmul.msk.f32.vlgmr.msrb.gmra.mxu2 %vm106_vm0, %v226_v46 }
 0x2d5   :  { %523 = vmatpush.msrb.mxu2 %v803_v8 }
 0x2d7   :  { %524 = vmatpush.msrb.mxu2 %v808_v9 }
 0x2d9   :  { %525 = vmatpush.msrb.mxu2 %v819_v10 }
 0x2db   :  { %526 = vmatpush.msrb.mxu2 %v826_v11 }
 0x2ec   :  { %v897_v47 = vpop.f32.mrf.mxu2 }
 0x2ee   :  { %v151_v49 = vpop.f32.mrf.mxu0 }
 0x2ef   :  { %v152_v50 = vadd.f32 %v858_v20, %v151_v49 }
 0x2f4   :  { %v899_v48 = vpop.f32.mrf.mxu2 }
 0x357   :  { %v246_v51 = vpop.f32.mrf.mxu2 }
 0x358   :  { %v249_v52 = vadd.f32 %v246_v51, %v152_v50 }
 0x35a   :  { %653 = vtanh.f32 %v249_v52 }
 0x360   :  { %v654_v53 = vpop.eup %653 }
 0x361   :  { %v251_v54 = vmul.f32 0.5, %v654_v53 }
 0x363   :  { %v252_v55 = vadd.f32 0.5, %v251_v54 }
 0x365   :  { %v253_v56 = vsel %vm863_vm5, %v654_v53, %v252_v55 }
 0x366   :  { %256 = vrot.lane.b32.xlu0 %v253_v56, %s738_s3  ;;  %v254_v59 = vmul.f32 %v253_v56, %v217_v34 }
 0x3d8   :  { %v257_v57 = vpop.permute.xlu0 %256 }
 0x3d9   :  { %v259_v58 = vmul.f32 %v257_v57, %v253_v56 }
 0x3db   :  { %261 = vrot.lane.b32.xlu1 %v259_v58, %s739_s25 }
 0x3e3   :  { %57 = vperm.xlu1 %646, %v44_v63  }
 0x44d   :  { %v262_v60 = vpop.permute.xlu1 %261 }
 0x44e   :  { %v264_v61 = vadd.f32 %v262_v60, %v254_v59 }
 0x450   :  { %655 = vtanh.f32 %v264_v61 }
 0x455   :  { %v58_v2 = vpop.permute.xlu1 %57 }
 0x456   :  { %v656_v62 = vpop.eup %655  ;;  %vm76_vm9 = vcmp.eq.s32.totalorder %v836_v13, %v58_v2 }
 0x457   :  { %267 = vrot.lane.b32.xlu2 %v656_v62, %s738_s3  ;;  %v606_v3 = vsel %vm76_vm9, 1.0, %v737_v15 }
 0x458   :  { %614 = vmatmul.msk.f32.gmra.mxu0 %vm106_vm0, %v606_v3  ;;  %v164_v3 = vadd.f32 %v858_v20, %v853_v19 }
 0x4b1   :  { %v268_v0 = vpop.permute.xlu2 %267 }
 0x4b2   :  { %v270_v1 = vmul.f32 %v268_v0, %v253_v56 }
 0x4b4   :  { %272 = vrot.lane.b32.xlu0 %v270_v1, %s739_s25 }
 0x4d5   :  { %v154_v5 = vpop.f32.mrf.mxu0 }
 0x4d6   :  { %v155_v6 = vadd.f32 %v858_v20, %v154_v5 }
 0x526   :  { %v273_v4 = vpop.permute.xlu0 %272 }
 0x527   :  { %621 = vmatmul.msk.f32.vlgmr.msra.gmra.mxu3 %vm106_vm0, %v273_v4 }
 0x5aa   :  { %v293_v7 = vpop.f32.mrf.mxu3 }
 0x5ab   :  { %v296_v8 = vadd.f32 %v293_v7, %v155_v6 }
 0x5ad   :  { %657 = vtanh.f32 %v296_v8 }
 0x5b3   :  { %v658_v9 = vpop.eup %657 }
 0x5b4   :  { %v298_v10 = vmul.f32 0.5, %v658_v9 }
 0x5b6   :  { %v299_v11 = vadd.f32 0.5, %v298_v10 }
 0x5b8   :  { %v300_v12 = vsel %vm863_vm5, %v658_v9, %v299_v11 }
 0x5b9   :  { %303 = vrot.lane.b32.xlu2 %v300_v12, %s738_s3  ;;  %v301_v22 = vmul.f32 %v300_v12, %v264_v61 }
 0x5c1   :  { %60 = vperm.xlu2 %645, %v45_v14  }
 0x613   :  { %v304_v16 = vpop.permute.xlu2 %303 }
 0x614   :  { %v306_v17 = vmul.f32 %v304_v16, %v300_v12 }
 0x616   :  { %308 = vrot.lane.b32.xlu0 %v306_v17, %s739_s25 }
 0x61b   :  { %v61_v18 = vpop.permute.xlu2 %60 }
 0x61c   :  { %vm77_vm10 = vcmp.eq.s32.totalorder %v836_v13, %v61_v18 }
 0x61d   :  { %v607_v21 = vsel %vm77_vm10, 1.0, %v737_v15 }
 0x61e   :  { %615 = vmatmul.msk.f32.gmra.mxu0 %vm106_vm0, %v607_v21 }
 0x688   :  { %v309_v23 = vpop.permute.xlu0 %308 }
 0x689   :  { %v311_v24 = vadd.f32 %v309_v23, %v301_v22  ;;  %v167_v22 = vadd.f32 %v858_v20, %v897_v47 }
 0x68b   :  { %659 = vtanh.f32 %v311_v24 }
 0x691   :  { %v660_v25 = vpop.eup %659 }
 0x692   :  { %314 = vrot.lane.b32.xlu1 %v660_v25, %s738_s3 }
 0x69b   :  { %v157_v30 = vpop.f32.mrf.mxu0 }
 0x69c   :  { %v158_v31 = vadd.f32 %v858_v20, %v157_v30 }
 0x704   :  { %v315_v26 = vpop.permute.xlu1 %314 }
 0x705   :  { %v317_v28 = vmul.f32 %v315_v26, %v300_v12 }
 0x707   :  { %319 = vrot.lane.b32.xlu0 %v317_v28, %s739_s25 }
 0x779   :  { %v320_v29 = vpop.permute.xlu0 %319 }
 0x77a   :  { %622 = vmatmul.msk.f32.vlgmr.msra.gmra.mxu1 %vm106_vm0, %v320_v29 }
 0x7f7   :  { %v340_v32 = vpop.f32.mrf.mxu1 }
 0x7f8   :  { %v343_v33 = vadd.f32 %v340_v32, %v158_v31 }
 0x7fa   :  { %661 = vtanh.f32 %v343_v33 }
 0x800   :  { %v662_v34 = vpop.eup %661 }
 0x801   :  { %v345_v35 = vmul.f32 0.5, %v662_v34 }
 0x803   :  { %v346_v36 = vadd.f32 0.5, %v345_v35 }
 0x805   :  { %v347_v37 = vsel %vm863_vm5, %v662_v34, %v346_v36 }
 0x806   :  { %350 = vrot.lane.b32.xlu1 %v347_v37, %s738_s3  ;;  %v348_v41 = vmul.f32 %v347_v37, %v311_v24 }
 0x878   :  { %v351_v38 = vpop.permute.xlu1 %350 }
 0x879   :  { %v353_v39 = vmul.f32 %v351_v38, %v347_v37  ;;  %v170_v38 = vadd.f32 %v858_v20, %v899_v48  ;;  %v556_v48 = vld [vmem:[#allocation2 + $0x18] sm:$0xff] }
 0x87a   :  { %578 = vmatpush.msra.mxu3 %v556_v48 }
 0x87b   :  { %355 = vrot.lane.b32.xlu2 %v353_v39, %s739_s25 }
 0x883   :  { %63 = vperm.xlu2 %645, %v46_v40  }
 0x8d5   :  { %v356_v42 = vpop.permute.xlu2 %355 }
 0x8d6   :  { %v358_v43 = vadd.f32 %v356_v42, %v348_v41 }
 0x8d8   :  { %663 = vtanh.f32 %v358_v43 }
 0x8dd   :  { %v64_v44 = vpop.permute.xlu2 %63 }
 0x8de   :  { %v664_v45 = vpop.eup %663  ;;  %vm78_vm11 = vcmp.eq.s32.totalorder %v836_v13, %v64_v44 }
 0x8df   :  { %v608_v46 = vsel %vm78_vm11, 1.0, %v737_v15  ;;  %361 = vrot.lane.b32.xlu0 %v664_v45, %s738_s3 }
 0x8e0   :  { %616 = vmatmul.msk.f32.gmra.mxu0 %vm106_vm0, %v608_v46 }
 0x951   :  { %v362_v49 = vpop.permute.xlu0 %361 }
 0x952   :  { %v364_v50 = vmul.f32 %v362_v49, %v347_v37 }
 0x954   :  { %366 = vrot.lane.b32.xlu1 %v364_v50, %s739_s25 }
 0x95d   :  { %v160_v52 = vpop.f32.mrf.mxu0 }
 0x95e   :  { %v161_v53 = vadd.f32 %v858_v20, %v160_v52  ;;  %v555_v52 = vld [vmem:[#allocation2 + $0x10] sm:$0xff] }
 0x95f   :  { %579 = vmatpush.msra.mxu3 %v555_v52 }
 0x9c6   :  { %v367_v51 = vpop.permute.xlu1 %366 }
 0x9c7   :  { %623 = vmatmul.msk.f32.vlgmr.msra.gmra.mxu2 %vm106_vm0, %v367_v51 }
 0xa4a   :  { %v387_v54 = vpop.f32.mrf.mxu2 }
 0xa4b   :  { %v390_v55 = vadd.f32 %v387_v54, %v161_v53  ;;  %v554_v53 = vld [vmem:[#allocation2 + $0x8] sm:$0xff] }
 0xa4c   :  { %580 = vmatpush.msra.mxu3 %v554_v53 }
 0xa4d   :  { %665 = vtanh.f32 %v390_v55 }
 0xa4e   :  { %581 = vmatpush.msra.mxu3 %v553_v27 }
 0xa53   :  { %v666_v13 = vpop.eup %665 }
 0xa54   :  { %v392_v56 = vmul.f32 0.5, %v666_v13 }
 0xa56   :  { %v393_v15 = vadd.f32 0.5, %v392_v56  ;;  %v648_v56 = vld [vmem:[%s989_s5] ss:$0 sm:$0xff] }
 0xa58   :  { %v394_v57 = vsel %vm863_vm5, %v666_v13, %v393_v15 }
 0xa59   :  { %397 = vrot.lane.b32.xlu0 %v394_v57, %s738_s3  ;;  %v395_v60 = vmul.f32 %v394_v57, %v358_v43 }
 0xacb   :  { %v398_v58 = vpop.permute.xlu0 %397 }
 0xacc   :  { %v400_v59 = vmul.f32 %v398_v58, %v394_v57 }
 0xace   :  { %402 = vrot.lane.b32.xlu1 %v400_v59, %s739_s25 }
 0xb40   :  { %v403_v61 = vpop.permute.xlu1 %402 }
 0xb41   :  { %v405_v62 = vadd.f32 %v403_v61, %v395_v60 }
 0xb43   :  { %667 = vtanh.f32 %v405_v62 }
 0xb49   :  { %v668_v63 = vpop.eup %667 }
 0xb4a   :  { %408 = vrot.lane.b32.xlu2 %v668_v63, %s738_s3 }
 0xba4   :  { %v409_v0 = vpop.permute.xlu2 %408 }
 0xba5   :  { %v411_v1 = vmul.f32 %v409_v0, %v394_v57 }
 0xba7   :  { %413 = vrot.lane.b32.xlu0 %v411_v1, %s739_s25 }
 0xc19   :  { %v414_v2 = vpop.permute.xlu0 %413 }
 0xc1a   :  { %624 = vmatmul.msk.f32.vlgmr.msrb.gmra.mxu3 %vm106_vm0, %v414_v2 }
 0xc9d   :  { %v434_v4 = vpop.f32.mrf.mxu3 }
 0xc9e   :  { %v437_v5 = vadd.f32 %v434_v4, %v164_v3 }
 0xca0   :  { %669 = vtanh.f32 %v437_v5 }
 0xca6   :  { %v670_v6 = vpop.eup %669 }
 0xca7   :  { %v439_v7 = vmul.f32 0.5, %v670_v6 }
 0xca9   :  { %v440_v8 = vadd.f32 0.5, %v439_v7 }
 0xcab   :  { %v441_v9 = vsel %vm863_vm5, %v670_v6, %v440_v8 }
 0xcac   :  { %444 = vrot.lane.b32.xlu1 %v441_v9, %s738_s3  ;;  %v442_v12 = vmul.f32 %v441_v9, %v405_v62 }
 0xd1e   :  { %v445_v10 = vpop.permute.xlu1 %444 }
 0xd1f   :  { %v447_v11 = vmul.f32 %v445_v10, %v441_v9 }
 0xd21   :  { %449 = vrot.lane.b32.xlu2 %v447_v11, %s739_s25 }
 0xd7b   :  { %v450_v14 = vpop.permute.xlu2 %449 }
 0xd7c   :  { %v452_v16 = vadd.f32 %v450_v14, %v442_v12 }
 0xd7e   :  { %671 = vtanh.f32 %v452_v16 }
 0xd84   :  { %v672_v19 = vpop.eup %671 }
 0xd85   :  { %455 = vrot.lane.b32.xlu0 %v672_v19, %s738_s3 }
 0xdf7   :  { %v456_v17 = vpop.permute.xlu0 %455 }
 0xdf8   :  { %v458_v18 = vmul.f32 %v456_v17, %v441_v9 }
 0xdfa   :  { %460 = vrot.lane.b32.xlu1 %v458_v18, %s739_s25 }
 0xe6c   :  { %v461_v21 = vpop.permute.xlu1 %460 }
 0xe6d   :  { %625 = vmatmul.msk.f32.vlgmr.msrb.gmra.mxu1 %vm106_vm0, %v461_v21 }
 0xeea   :  { %v481_v23 = vpop.f32.mrf.mxu1 }
 0xeeb   :  { %v484_v24 = vadd.f32 %v481_v23, %v167_v22 }
 0xeed   :  { %673 = vtanh.f32 %v484_v24 }
 0xef3   :  { %v674_v25 = vpop.eup %673 }
 0xef4   :  { %v486_v26 = vmul.f32 0.5, %v674_v25 }
 0xef6   :  { %v487_v28 = vadd.f32 0.5, %v486_v26 }
 0xef8   :  { %v488_v29 = vsel %vm863_vm5, %v674_v25, %v487_v28 }
 0xef9   :  { %491 = vrot.lane.b32.xlu2 %v488_v29, %s738_s3  ;;  %v489_v32 = vmul.f32 %v488_v29, %v452_v16 }
 0xf53   :  { %v492_v30 = vpop.permute.xlu2 %491 }
 0xf54   :  { %v494_v31 = vmul.f32 %v492_v30, %v488_v29 }
 0xf56   :  { %496 = vrot.lane.b32.xlu0 %v494_v31, %s739_s25 }
 0xfc8   :  { %v497_v33 = vpop.permute.xlu0 %496 }
 0xfc9   :  { %v499_v34 = vadd.f32 %v497_v33, %v489_v32 }
 0xfcb   :  { %675 = vtanh.f32 %v499_v34 }
 0xfd1   :  { %v676_v47 = vpop.eup %675 }
 0xfd2   :  { %502 = vrot.lane.b32.xlu1 %v676_v47, %s738_s3 }
0x1044   :  { %v503_v35 = vpop.permute.xlu1 %502 }
0x1045   :  { %v505_v36 = vmul.f32 %v503_v35, %v488_v29 }
0x1047   :  { %507 = vrot.lane.b32.xlu2 %v505_v36, %s739_s25 }
0x10a1   :  { %v508_v37 = vpop.permute.xlu2 %507 }
0x10a2   :  { %626 = vmatmul.msk.f32.vlgmr.msrb.gmra.mxu2 %vm106_vm0, %v508_v37 }
0x1125   :  { %v528_v39 = vpop.f32.mrf.mxu2 }
0x1126   :  { %v531_v40 = vadd.f32 %v528_v39, %v170_v38 }
0x1128   :  { %677 = vtanh.f32 %v531_v40 }
0x112e   :  { %v678_v41 = vpop.eup %677 }
0x112f   :  { %v533_v42 = vmul.f32 0.5, %v678_v41 }
0x1131   :  { %v534_v43 = vadd.f32 0.5, %v533_v42 }
0x1133   :  { %v535_v44 = vsel %vm863_vm5, %v678_v41, %v534_v43 }
0x1134   :  { %538 = vrot.lane.b32.xlu0 %v535_v44, %s738_s3  ;;  %v536_v49 = vmul.f32 %v535_v44, %v499_v34 }
0x11a6   :  { %v539_v45 = vpop.permute.xlu0 %538 }
0x11a7   :  { %v541_v46 = vmul.f32 %v539_v45, %v535_v44 }
0x11a9   :  { %543 = vrot.lane.b32.xlu1 %v541_v46, %s739_s25 }
0x121b   :  { %v544_v50 = vpop.permute.xlu1 %543 }
0x121c   :  { %v546_v51 = vadd.f32 %v544_v50, %v536_v49 }
0x121e   :  { %679 = vtanh.f32 %v546_v51 }
0x1224   :  { %v680_v20 = vpop.eup %679 }
0x1225   :  { %549 = vrot.lane.b32.xlu2 %v680_v20, %s738_s3 }
0x127f   :  { %v550_v54 = vpop.permute.xlu2 %549 }
0x1280   :  { %v552_v55 = vmul.f32 %v550_v54, %v535_v44 }
0x1282   :  { %562 = vrot.lane.b32.xlu0 %v552_v55, %s739_s25 }
0x12f4   :  { %v563_v13 = vpop.permute.xlu0 %562 }
0x12f5   :  { %627 = vmatmul.msk.f32.vlgmr.msra.gmra.mxu3 %vm106_vm0, %v563_v13 }
0x1378   :  { %v583_v15 = vpop.f32.mrf.mxu3 }
0x1379   :  { %v584_v57 = vadd.f32 %v648_v56, %v583_v15 }
0x137b   :  { %586 = vst [vmem:[#allocation5] sm:$0xff] %v584_v57 }
0x137c   :  { %597 = dma.vmem_to_hbm [thread:$0]  %s593_s13, 128, %s595_s16, [#allocation4]  }
0x137d   :  { %731 = dma.done.wait [#allocation4], 128  }
0x137e   :  { %732 = vsyncadd [#allocation4], 4294967168 }
0x137f   :  { %602 = vsyncpa [#allocation3], 1 }
0x1380   :  { %603 = vsyncpa [#allocation4], 1 }

</bundles_post_ra>
